<compile_context>
chip_gen: v7x
topology: tpu7x:2x2x1
jax: 0.10.0
libtpu: 0.0.40
codegen_flags: <defaults>
</compile_context>

<pallas_src>
import functools

import jax
import jax.numpy as jnp
from jax.experimental import pallas as pl
from jax.experimental.pallas import tpu as pltpu

EPS = 1e-5  # nn.LayerNorm default


def _ln_linear(x, w, b):
    """LayerNorm (affine already folded into w/b) + Linear on one row tile."""
    x = x.astype(jnp.float32)
    inv_d = 1.0 / x.shape[-1]
    mean = jnp.sum(x, axis=-1, keepdims=True) * inv_d
    xc = x - mean
    var = jnp.sum(xc * xc, axis=-1, keepdims=True) * inv_d
    xn = xc * jax.lax.rsqrt(var + EPS)
    out = jnp.dot(xn.astype(jnp.bfloat16), w, preferred_element_type=jnp.float32)
    return out + b.astype(jnp.float32)


def _eval_kernel(x_ref, w_ref, b_ref, o_ref):
    o_ref[...] = _ln_linear(x_ref[...], w_ref[...], b_ref[...]).astype(o_ref.dtype)


def _train_kernel(x_ref, w_ref, b_ref, bits_ref, o_ref, *, keep_threshold, inv_keep):
    out = _ln_linear(x_ref[...], w_ref[...], b_ref[...])
    # Integer-threshold dropout: keep iff raw uint32 bits >= rate * 2^32.
    keep = bits_ref[...] >= jnp.uint32(keep_threshold)
    o_ref[...] = jnp.where(keep, out * inv_keep, 0.0).astype(o_ref.dtype)


def prenorm_drop_linear(x, gamma, beta, w, b, *,
                        dropout_rate=0.0, training=False, seed=0,
                        tile_rows=512):
    """x: (B, N, D) -> (B, N, D_out); fused LayerNorm + Linear + Dropout."""
    B, N, D = x.shape
    D_out = w.shape[1]
    rows = B * N
    out_dtype = x.dtype  # TODO(synk): switch to bf16 output if downstream tolerates it (halves HBM writeback).

    # --- fold LayerNorm affine into the linear layer (exactly equivalent) ---
    gamma_f = gamma.reshape(D).astype(jnp.float32)
    beta_f = beta.reshape(D).astype(jnp.float32)
    w_f32 = w.astype(jnp.float32)
    w_folded = (gamma_f[:, None] * w_f32).astype(jnp.bfloat16)          # (D, D_out) bf16, resident
    b_folded = (beta_f @ w_f32 + b.reshape(D_out).astype(jnp.float32)).reshape(1, D_out)

    x2 = x.reshape(rows, D)
    apply_dropout = bool(training) and float(dropout_rate) > 0.0
    out_itemsize = jnp.dtype(out_dtype).itemsize

    # --- row-tile selection -------------------------------------------------
    rows8 = ((rows + 7) // 8) * 8
    tile_rows = max(8, (int(tile_rows) // 8) * 8)
    tile_rows = min(tile_rows, rows8)
    # v7x has 2 TensorCores: prefer >= 2 grid steps so "parallel" spreads work.
    if rows8 >= 16:
        half = max(8, ((rows8 // 2 + 7) // 8) * 8)
        tile_rows = min(tile_rows, half)

    # Clamp the tile to a VMEM budget that is safe on v7x (64 MiB/TC) as well
    # as v5e/v6e (128 MiB).  W/bias are single-buffered; x/out (+ mask bits)
    # are double-buffered by the pipeline.
    budget = 40 * 1024 * 1024
    per_row = 2 * D * 4 + 2 * D_out * out_itemsize + (2 * D_out * 4 if apply_dropout else 0)
    fixed = D * D_out * 2 + D_out * 4
    avail = budget - fixed
    if avail >= 8 * per_row:
        max_tile = (avail // per_row) // 8 * 8
    else:
        # TODO(synk): add a D_out grid axis (tiled W) when bf16 W alone nears the VMEM budget.
        max_tile = 8
    tile_rows = min(tile_rows, max(8, int(max_tile)))

    grid = (pl.cdiv(rows, tile_rows),)   # tail tile handled by Pallas padding
    vmem_limit = int(min(64 * 1024 * 1024,
                         max(fixed + tile_rows * per_row + 4 * 1024 * 1024,
                             8 * 1024 * 1024)))

    # --- specs ---------------------------------------------------------------
    resident = pl.Buffered(buffer_count=1)   # grid-invariant: no double buffering
    x_spec = pl.BlockSpec((tile_rows, D), lambda i: (i, 0))
    w_spec = pl.BlockSpec((D, D_out), lambda i: (0, 0), pipeline_mode=resident)
    b_spec = pl.BlockSpec((1, D_out), lambda i: (0, 0), pipeline_mode=resident)
    out_spec = pl.BlockSpec((tile_rows, D_out), lambda i: (i, 0))

    in_specs = [x_spec, w_spec, b_spec]
    args = [x2, w_folded, b_folded]

    if apply_dropout:
        rate = float(dropout_rate)
        keep_threshold = min(int(round(rate * 4294967296.0)), 4294967295)
        inv_keep = 1.0 / (1.0 - rate)
        # TODO(synk): in-kernel pltpu.prng_* would avoid streaming the mask from
        # HBM but has no interpret/CPU lowering; semantics (keep-prob, inverted
        # scaling) match torch.nn.Dropout, exact masks do not.
        bits = jax.random.bits(jax.random.PRNGKey(int(seed)), (rows, D_out), dtype=jnp.uint32)
        in_specs.append(pl.BlockSpec((tile_rows, D_out), lambda i: (i, 0)))
        args.append(bits)
        kernel = functools.partial(_train_kernel,
                                   keep_threshold=keep_threshold,
                                   inv_keep=inv_keep)
    else:
        kernel = _eval_kernel

    bytes_accessed = (x2.size * x2.dtype.itemsize
                      + D * D_out * 2
                      + D_out * 4
                      + rows * D_out * out_itemsize
                      + (rows * D_out * 4 if apply_dropout else 0))
    cost = pl.CostEstimate(flops=2 * rows * D * D_out,
                           transcendentals=rows,          # rsqrt per row
                           bytes_accessed=int(bytes_accessed))

    out2 = pl.pallas_call(
        kernel,
        out_shape=jax.ShapeDtypeStruct((rows, D_out), out_dtype),
        grid=grid,
        in_specs=in_specs,
        out_specs=out_spec,
        compiler_params=pltpu.CompilerParams(
            dimension_semantics=("parallel",),   # shards row tiles across v7x TCs
            vmem_limit_bytes=vmem_limit,
        ),
        cost_estimate=cost,
    )(*args)

    return out2.reshape(B, N, D_out)


if __name__ == "__main__":
    # Small shapes consistent with the module; D=128 keeps stores lane-dense.
    B, N, D = 2, 8, 128

    key = jax.random.PRNGKey(0)
    kx, kw = jax.random.split(key)

    x = jax.random.normal(kx, (B, N, D), dtype=jnp.float32)

    # nn.LayerNorm defaults: gamma=1, beta=0; fn = Linear(D, D), zero bias.
    gamma = jnp.ones((D,), dtype=jnp.float32)
    beta = jnp.zeros((D,), dtype=jnp.float32)
    w = (jax.random.normal(kw, (D, D), dtype=jnp.float32) / jnp.sqrt(D)).astype(jnp.float32)
    b = jnp.zeros((D,), dtype=jnp.float32)

    # --- eval mode (dropout is identity): check vs pure-JAX reference -------
    out = prenorm_drop_linear(x, gamma, beta, w, b,
                              dropout_rate=0.1, training=False)
    out = jax.block_until_ready(out)
    assert out.shape == (B, N, D)

    # Reference uses the same folded + bf16-rounded weights the kernel sees.
    w_folded_ref = (gamma[:, None] * w).astype(jnp.bfloat16).astype(jnp.float32)
    b_folded_ref = beta @ w + b
    mean = jnp.mean(x, axis=-1, keepdims=True)
    var = jnp.mean((x - mean) ** 2, axis=-1, keepdims=True)
    xn = (x - mean) / jnp.sqrt(var + EPS)
    ref = xn @ w_folded_ref + b_folded_ref
    assert jnp.allclose(out, ref, atol=2e-2, rtol=2e-2), "mismatch vs reference"

    # --- training mode: dropout mask applied inside the kernel --------------
    p = 0.1
    out_drop = prenorm_drop_linear(x, gamma, beta, w, b,
                                   dropout_rate=p, training=True, seed=123)
    out_drop = jax.block_until_ready(out_drop)
    assert out_drop.shape == (B, N, D)
    assert bool(jnp.all(jnp.isfinite(out_drop)))
    zero_frac = float(jnp.mean((out_drop == 0.0).astype(jnp.float32)))
    assert 0.02 <= zero_frac <= 0.30, f"dropout zero fraction {zero_frac} implausible"
    # kept elements must equal the eval output scaled by 1/(1-p)
    kept = out_drop != 0.0
    scaled = out * jnp.float32(1.0 / (1.0 - p))
    max_err = float(jnp.where(kept, jnp.abs(out_drop - scaled), 0.0).max())
    assert max_err < 1e-3, f"kept-value mismatch {max_err}"

    print("KERNEL_OK")
</pallas_src>

<mosaic_0001>
module attributes {stable_mosaic.version = 11 : i64} {
  func.func @_eval_kernel(%arg0: i32, %arg1: memref<8x128xf32, #tpu.memory_space<vmem>>, %arg2: memref<128x128xbf16, #tpu.memory_space<vmem>>, %arg3: memref<1x128xf32, #tpu.memory_space<vmem>>, %arg4: memref<8x128xf32, #tpu.memory_space<vmem>>) attributes {dimension_semantics = [#tpu.dimension_semantics<parallel>], iteration_bounds = array<i64: 2>, scalar_prefetch = 0 : i64, scratch_operands = 0 : i64, tpu.core_type = #tpu.core_type<tc>, window_params = [{transform_indices = @transform_0, window_bounds = array<i64: 8, 128>}, {pipeline_mode = #tpu.pipeline_mode<synchronous>, transform_indices = @transform_1, window_bounds = array<i64: 128, 128>}, {pipeline_mode = #tpu.pipeline_mode<synchronous>, transform_indices = @transform_2, window_bounds = array<i64: 1, 128>}, {transform_indices = @transform_3, window_bounds = array<i64: 8, 128>}]} {
    %c0 = arith.constant 0 : index
    %c0_0 = arith.constant 0 : index
    %0 = vector.load %arg1[%c0, %c0_0] : memref<8x128xf32, #tpu.memory_space<vmem>>, vector<8x128xf32>
    %c0_1 = arith.constant 0 : index
    %c0_2 = arith.constant 0 : index
    %1 = vector.load %arg2[%c0_1, %c0_2] : memref<128x128xbf16, #tpu.memory_space<vmem>>, vector<128x128xbf16>
    %c0_3 = arith.constant 0 : index
    %c0_4 = arith.constant 0 : index
    %2 = vector.load %arg3[%c0_3, %c0_4] : memref<1x128xf32, #tpu.memory_space<vmem>>, vector<1x128xf32>
    %cst = arith.constant dense<0.000000e+00> : vector<8xf32>
    %3 = vector.multi_reduction <add>, %0, %cst [1] : vector<8x128xf32> to vector<8xf32>
    %4 = vector.shape_cast %3 : vector<8xf32> to vector<8x1xf32>
    %cst_5 = arith.constant 7.812500e-03 : f32
    %5 = vector.broadcast %cst_5 : f32 to vector<8x1xf32>
    %6 = arith.mulf %4, %5 : vector<8x1xf32>
    %7 = vector.broadcast %6 : vector<8x1xf32> to vector<8x128xf32>
    %8 = arith.subf %0, %7 : vector<8x128xf32>
    %9 = arith.mulf %8, %8 : vector<8x128xf32>
    %cst_6 = arith.constant dense<0.000000e+00> : vector<8xf32>
    %10 = vector.multi_reduction <add>, %9, %cst_6 [1] : vector<8x128xf32> to vector<8xf32>
    %11 = vector.shape_cast %10 : vector<8xf32> to vector<8x1xf32>
    %cst_7 = arith.constant 7.812500e-03 : f32
    %12 = vector.broadcast %cst_7 : f32 to vector<8x1xf32>
    %13 = arith.mulf %11, %12 : vector<8x1xf32>
    %cst_8 = arith.constant 9.99999974E-6 : f32
    %14 = vector.broadcast %cst_8 : f32 to vector<8x1xf32>
    %15 = arith.addf %13, %14 : vector<8x1xf32>
    %16 = math.rsqrt %15 : vector<8x1xf32>
    %17 = vector.broadcast %16 : vector<8x1xf32> to vector<8x128xf32>
    %18 = arith.mulf %8, %17 : vector<8x128xf32>
    %19 = arith.truncf %18 : vector<8x128xf32> to vector<8x128xbf16>
    %cst_9 = arith.constant dense<0.000000e+00> : vector<8x128xf32>
    %20 = tpu.matmul %19, %1, %cst_9 {dimension_numbers = #tpu.dot_dimension_numbers<[1], [0], [0], [1], [0, 0, 1, 1], [], []>} : vector<8x128xbf16>, vector<128x128xbf16>, vector<8x128xf32> -> vector<8x128xf32>
    %21 = vector.broadcast %2 : vector<1x128xf32> to vector<8x128xf32>
    %22 = arith.addf %20, %21 : vector<8x128xf32>
    %c0_10 = arith.constant 0 : index
    %c0_11 = arith.constant 0 : index
    %23 = vector.load %arg4[%c0_10, %c0_11] : memref<8x128xf32, #tpu.memory_space<vmem>>, vector<8x128xf32>
    tpu.vector_store %arg4[%c0_10, %c0_11], %22 {strides = array<i32>} : memref<8x128xf32, #tpu.memory_space<vmem>>, vector<8x128xf32>,
    return
  }
  func.func @transform_0(%arg0: i32) -> (i32, i32) {
    %c0_i32 = arith.constant 0 : i32
    %c0_i32_0 = arith.constant 0 : i32
    return %arg0, %c0_i32 : i32, i32
  }
  func.func @transform_1(%arg0: i32) -> (i32, i32) {
    %c0_i32 = arith.constant 0 : i32
    %c0_i32_0 = arith.constant 0 : i32
    %c0_i32_1 = arith.constant 0 : i32
    return %c0_i32, %c0_i32_0 : i32, i32
  }
  func.func @transform_2(%arg0: i32) -> (i32, i32) {
    %c0_i32 = arith.constant 0 : i32
    %c0_i32_0 = arith.constant 0 : i32
    %c0_i32_1 = arith.constant 0 : i32
    return %c0_i32, %c0_i32_0 : i32, i32
  }
  func.func @transform_3(%arg0: i32) -> (i32, i32) {
    %c0_i32 = arith.constant 0 : i32
    %c0_i32_0 = arith.constant 0 : i32
    return %arg0, %c0_i32 : i32, i32
  }
}

</mosaic_0001>

<bundles_post_ra>
// kernel: tpu_custom_call.1
= control target key start
LH: loop header
LB: loop body
LE: loop exit
PB: predicated region body
PF: predicated region fallthrough
CT: control target
= control target key end

     0   :  { %8 = vsyncpa [#allocation3], 0  ;;  %s904_s0 = inlined_call_operand.hbm [shape: f32[16,128], index: 0, kind: input, shape index: {}]   ;;  %s905_s1 = inlined_call_operand.hbm [shape: bf16[128,128], index: 1, kind: input, shape index: {}]   ;;  %s906_s2 = inlined_call_operand.vmem [shape: f32[1,128], index: 2, kind: input, shape index: {}]   ;;  %s907_s3 = inlined_call_operand.hbm [shape: f32[16,128], index: 3, kind: output, shape index: {}]  }
   0x1   :  { %10 = vsyncpa [#allocation3 + $0x1], 0 }
   0x2   :  { %11 = vsyncpa [#allocation6], 0 }
   0x3   :  { %12 = vsyncpa [#allocation4], 0 }
   0x4   :  { %14 = vsyncpa [#allocation4 + $0x1], 0  ;;  %s701_s12 = smov 0   ;;  %s703_s13 = smov 0  }
   0x5   :  { %s705_s14 = smov 0   ;;  %s707_s15 = smov 0  }
   0x6 LB: > { %s722_s16 = sadd.s32 4294967295, %s672_s15   ;;  %s421_s17 = sadd.s32 4294967294, %s672_s15   ;;  %s672_s15 = sphi %s707_s15, %s927_s15   ;;  %s668_s14 = sphi %s705_s14, %s926_s14   ;;  %s664_s13 = sphi %s703_s13, %s925_s13   ;;  %s660_s12 = sphi %s701_s12, %s924_s12  }
   0x7   : > { %p40_p0 = scmp.ne.s32.totalorder %s664_s13, %s660_s12  ;;  %p908_p1 = scmp.eq.s32.totalorder %s722_s16, 0 }
   0x8   : > { %p112_p3 = scmp.eq.s32.totalorder %s421_s17, 1  ;;  %p422_p5 = scmp.ge.s32.totalorder %s672_s15, 1 }
   0x9   : > { %p731_p4 = por %p908_p1, %p40_p0  ;;  %p119_p7 = scmp.lt.s32.totalorder %s672_s15, 3 }
   0xa   : > { %p736_p6 = por %p112_p3, %p40_p0  ;;  %s674_s21 = smov [#allocation5]  }
   0xb   : > { %s911_s18 = scalar_select %p731_p4, 1, 0 }
   0xc   : > { %s912_s19 = scalar_select %p736_p6, 1, 0 }
   0xd   : > { %p741_p8 = pnand %p422_p5, %p119_p7  ;;  %s131_s22 = sshll.u32 %s674_s21, 4  ;;  %s745_s22 = int_to_ptr.vmem [resolvable:$true] %s131_s22 }
   0xe   : > { %s757_s24 = sadd.s32 1, %s672_s15   ;;  %s27_s25 = sadd.s32 1, %s668_s14 }
   0xf   : > { %s913_s20 = scalar_select %p741_p8, 1, 0 }
  0x10   : > { %p481_p9 = pneg %p741_p8  ;;  %s24_s26 = ssub.s32 %s672_s15, %s757_s24 }
  0x11   : > { %s544_s29 = scalar_lea.hbm %s905_s1, 1024 }
  0x12   : > { %p752_p11 = pnand %p481_p9, %p908_p1  ;;  %p545_p12 = scmp.ne.s32.totalorder %s905_s1, %s544_s29 }
  0x13   : > { %p551_p5 = scmp.lt.u32.totalorder %s544_s29, %s905_s1 }
  0x14   : > { %p546_p13 = pneg %p752_p11 }
  0x16   : > { %p547_p0 = pnand %p546_p13, %p545_p12 }
  0x18   : > { %p548_p3 = pneg %p547_p0 }
  0x1a   : > { %p553_p7 = pnand %p551_p5, %p548_p3 }
  0x1c   : > { %556 = shalt.err (!%p553_p7)
}
  0x1d   : > { %s557_s7 = scalar_lea.vmem %s745_s22, 1024  ;;  %p565_p2 = scmp.lt.s32.totalorder %s745_s22, %s745_s22 }
  0x1e   : > { %p558_p9 = scmp.ne.s32.totalorder %s745_s22, %s557_s7  ;;  %p566_p6 = scmp.lt.s32.totalorder %s557_s7, %s557_s7 }
  0x20   : > { %p560_p10 = pnand %p558_p9, %p546_p13  ;;  %p567_p4 = por %p566_p6, %p565_p2 }
  0x22   : > { %p561_p1 = pneg %p560_p10 }
  0x24   : > { %p568_p8 = pnand %p567_p4, %p561_p1 }
  0x26   : > { %571 = shalt.err (!%p568_p8)
}
  0x27   : > { %s675_s8 = smov 64   ;;  %s676_s9 = smov 4  }
  0x28   : > { %484 = dma.hbm_to_vmem [thread:$0]  (!%p752_p11), %s905_s1, 1024, %s745_s22, [#allocation6], %s675_s8, %s675_s8, %s676_s9  }
  0x29   : > { %p25_p2 = scmp.eq.s32.totalorder %s24_s26, 0  ;;  %p34_p1 = scmp.ne.s32.totalorder %s668_s14, %s664_s13 }
  0x2a   : > { %p35_p4 = scmp.eq.s32.totalorder %s672_s15, 0  ;;  %p494_p6 = scmp.lt.s32.totalorder %s672_s15, 2 }
  0x2b   : > { %s788_s17 = scalar_select %p25_p2, %s668_s14, %s27_s25  }
  0x2c   : > { %p36_p8 = por %p35_p4, %p34_p1  ;;  %p915_p10 = scmp.eq.s32.totalorder %s722_s16, 1 }
  0x2d   : > { %s148_s27 = sand.u32 1, %s668_s14   ;;  %s426_s28 = sshll.u32 %s672_s15, 7 }
  0x2e   : > { %p792_p12 = por %p915_p10, %p34_p1  ;;  %s425_s29 = sshll.u32 %s148_s27, 3 }
  0x2f   : > { %s801_s4 = scalar_lea.hbm %s904_s0, %s426_s28  ;;  %s152_s22 = scalar_lea.vmem [#allocation2], %s425_s29 }
  0x30   : > { %s159_s25 = sshll.u32 %s152_s22, 4  ;;  %p803_p11 = pnand %p494_p6, %p36_p8  ;;  %s807_s25 = int_to_ptr.vmem [resolvable:$true] %s159_s25 }
  0x31   : > { %s149_s5 = scalar_lea.sflag [#allocation3], %s148_s27  ;;  %s572_s6 = scalar_lea.hbm %s801_s4, 128 }
  0x32   : > { %p573_p13 = scmp.ne.s32.totalorder %s801_s4, %s572_s6  ;;  %p574_p0 = pneg %p803_p11 }
  0x33   : > { %s577_s9 = scalar_lea.hbm %s904_s0, 256  ;;  %p578_p7 = scmp.lt.u32.totalorder %s801_s4, %s904_s0 }
  0x34   : > { %p575_p3 = pnand %p574_p0, %p573_p13  ;;  %p579_p9 = scmp.lt.u32.totalorder %s577_s9, %s572_s6 }
  0x35   : > { %p581_p1 = scmp.lt.u32.totalorder %s572_s6, %s801_s4 }
  0x36   : > { %p576_p5 = pneg %p575_p3  ;;  %p580_p2 = por %p579_p9, %p578_p7 }
  0x38   : > { %p582_p4 = por %p581_p1, %p580_p2 }
  0x3a   : > { %p583_p6 = pnand %p582_p4, %p576_p5 }
  0x3c   : > { %586 = shalt.err (!%p583_p6)
}
  0x3d   : > { %s587_s27 = scalar_lea.vmem %s807_s25, 128  ;;  %s677_s28 = smov [#allocation2]  }
  0x3e   : > { %p588_p8 = scmp.ne.s32.totalorder %s807_s25, %s587_s27  ;;  %s592_s29 = sshll.u32 %s677_s28, 4  ;;  %s593_s29 = int_to_ptr.vmem [resolvable:$false] %s592_s29 }
  0x3f   : > { %s594_s23 = scalar_lea.vmem %s593_s29, 256  ;;  %p595_p3 = scmp.lt.s32.totalorder %s807_s25, %s593_s29 }
  0x40   : > { %p590_p10 = pnand %p588_p8, %p574_p0  ;;  %p596_p7 = scmp.lt.s32.totalorder %s594_s23, %s587_s27 }
  0x42   : > { %p591_p13 = pneg %p590_p10  ;;  %p597_p9 = por %p596_p7, %p595_p3 }
  0x44   : > { %p598_p2 = pnand %p597_p9, %p591_p13 }
  0x46   : > { %601 = shalt.err (!%p598_p2)
}
  0x47   : > { %488 = dma.hbm_to_vmem [thread:$0]  (!%p803_p11), %s801_s4, 128, %s807_s25, %s149_s5  }
  0x48   : > { %p918_p5 = scmp.ne.s32.totalorder %s913_s20, 0 }
  0x49   : > { %s837_s30 = sand.u32 (!%p918_p5), 1, %s664_s13   ;;  %p919_p0 = scmp.ne.s32.totalorder (!%p918_p5), %s911_s18, 0 }
  0x4a   : > { %168 = sbr.rel (%p918_p5) target bundleno = 623 (0x26f), region = 32  ;;  %s428_s22 = sshll.u32 (!%p918_p5), %s837_s30, 3 }
  0x4b   : > { %s171_s6 = scalar_lea.sflag (!%p918_p5), [#allocation3], %s837_s30  ;;  %s174_s7 = scalar_lea.vmem (!%p918_p5), [#allocation2], %s428_s22 }
  0x51   : > { %647 = dma.done.wait (%p919_p0), %s171_s6, 128  }
  0x52   : > { %649 = vsyncadd (%p919_p0), %s171_s6, 4294967168  ;;  %p920_p11 = scmp.eq.s32.totalorder %s722_s16, 0 }
  0x54   : > { %651 = dma.done.wait (%p920_p11), [#allocation6], 1024   ;;  %p921_p1 = pmov %p920_p11 }
  0x55   : > { %v202_v0 = vld [vmem:[%s174_s7] sm:$0xff]  ;;  %v534_v1 = vld [vmem:[#allocation5] sm:$0xff]   ;;  %v678_v2 = vmov 0.0   ;;  %v535_v3 = vld [vmem:[#allocation5 + $0x8] sm:$0xff]   ;;  %vm679_vm0 = vmmov 0   ;;  %s441_s4 = sshll.u32 %s722_s16, 7 }
  0x56   : > { %653 = vsyncadd (%p921_p1), [#allocation6], 4294966272  ;;  %220 = vadd.xlane.f32.xlu0 %v202_v0  ;;  %453 = vmatprep.subr.bf16.mxu0 %v678_v2  ;;  %v536_v4 = vld [vmem:[#allocation5 + $0x10] sm:$0xff]   ;;  %v537_v9 = vld [vmem:[#allocation5 + $0x18] sm:$0xff]   ;;  %s200_s25 = scalar_lea.vmem [#allocation7], %s428_s22  ;;  %s860_s9 = scalar_lea.hbm %s907_s3, %s441_s4 }
  0x57   : > { %454 = vmatpush3.bf16.msra.mxu0 %v534_v1  ;;  %v538_v10 = vld [vmem:[#allocation5 + $0x20] sm:$0xff]   ;;  %v539_v11 = vld [vmem:[#allocation5 + $0x28] sm:$0xff]   ;;  %469 = vmatprep.mubr.msk.bf16.mxu0 %vm679_vm0, %v678_v2  ;;  %v540_v12 = vld [vmem:[#allocation5 + $0x30] sm:$0xff]   ;;  %s341_s26 = sshll.u32 %s200_s25, 4  ;;  %s328_s16 = scalar_lea.sflag [#allocation4], %s837_s30  ;;  %s862_s26 = int_to_ptr.vmem [resolvable:$true] %s341_s26 }
  0x58   : > { %455 = vmatprep.subr.bf16.mxu0 %v678_v2  ;;  %v541_v13 = vld [vmem:[#allocation5 + $0x38] sm:$0xff]   ;;  %v431_v20 = vld [vmem:[%s906_s2] ss:$0 sm:$0xff]  ;;  %s602_s10 = scalar_lea.vmem %s862_s26, 128  ;;  %s680_s11 = smov [#allocation7]  }
  0x59   : > { %p603_p4 = scmp.ne.s32.totalorder %s862_s26, %s602_s10  ;;  %s606_s27 = sshll.u32 %s680_s11, 4  ;;  %s607_s27 = int_to_ptr.vmem [resolvable:$false] %s606_s27 }
  0x5a   : > { %s608_s28 = scalar_lea.vmem %s607_s27, 256  ;;  %p609_p10 = scmp.lt.s32.totalorder %s862_s26, %s607_s27 }
  0x5b   : > { %456 = vmatpush3.bf16.msra.mxu0 %v535_v3  ;;  %p604_p6 = pnand %p603_p4, %p792_p12  ;;  %p610_p13 = scmp.lt.s32.totalorder %s608_s28, %s602_s10 }
  0x5c   : > { %457 = vmatprep.subr.bf16.mxu0 %v678_v2 }
  0x5d   : > { %p605_p8 = pneg %p604_p6  ;;  %p611_p3 = por %p610_p13, %p609_p10 }
  0x5f   : > { %458 = vmatpush3.bf16.msra.mxu0 %v536_v4  ;;  %p612_p7 = pnand %p611_p3, %p605_p8 }
  0x60   : > { %459 = vmatprep.subr.bf16.mxu0 %v678_v2 }
  0x63   : > { %460 = vmatpush3.bf16.msra.mxu0 %v537_v9 }
  0x64   : > { %461 = vmatprep.subr.bf16.mxu0 %v678_v2 }
  0x67   : > { %462 = vmatpush3.bf16.msra.mxu0 %v538_v10 }
  0x68   : > { %463 = vmatprep.subr.bf16.mxu0 %v678_v2 }
  0x6b   : > { %464 = vmatpush3.bf16.msra.mxu0 %v539_v11 }
  0x6c   : > { %465 = vmatprep.subr.bf16.mxu0 %v678_v2 }
  0x6f   : > { %466 = vmatpush3.bf16.msra.mxu0 %v540_v12 }
  0x70   : > { %467 = vmatprep.subr.bf16.mxu0 %v678_v2 }
  0x73   : > { %468 = vmatpush3.bf16.msra.mxu0 %v541_v13 }
  0xe3   : > { %v221_v5 = vpop.xlane.xlu0 %220 }
  0xe4   : > { %v222_v6 = vmul.f32 0.0078125, %v221_v5 }
  0xe6   : > { %v223_v7 = vsub.f32 %v202_v0, %v222_v6 }
  0xe8   : > { %v224_v8 = vmul.f32 %v223_v7, %v223_v7 }
  0xea   : > { %225 = vadd.xlane.f32.xlu0 %v224_v8 }
 0x177   : > { %v226_v14 = vpop.xlane.xlu0 %225 }
 0x178   : > { %v227_v15 = vmul.f32 0.0078125, %v226_v14 }
 0x17a   : > { %v228_v16 = vadd.f32 1e-05, %v227_v15 }
 0x17c   : > { %542 = vrsqrt.f32 %v228_v16 }
 0x186   : > { %v543_v17 = vpop.eup %542 }
 0x187   : > { %v230_v18 = vmul.f32 %v543_v17, %v223_v7 }
 0x189   : > { %v231_v19 = vpack.c.bf16 %v230_v18, %v230_v18 }
 0x18b   : > { %470 = vmatmul.mubr.bf16.vlgmr.msra.gmra.mrb[0].mxu0 %v231_v19 }
 0x25e   : > { %v320_v21 = vpop.f32.mrb[0].mxu0 }
 0x25f   : > { %v321_v22 = vadd.f32 %v431_v20, %v320_v21  ;;  %v471_v23 = vpop.f32.mrb[1].mxu0 }
 0x260   : > { %v323_v24 = vpop.f32.mrb[2].mxu0 }
 0x261   : > { %326 = vst [vmem:[%s200_s25] sm:$0xff] %v321_v22  ;;  %v472_v25 = vpop.f32.mrb[3].mxu0 }
 0x262   : > { %615 = shalt.err (!%p612_p7)
}
 0x263   : > { %s616_s29 = scalar_lea.hbm %s860_s9, 128  ;;  %s620_s22 = scalar_lea.hbm %s907_s3, 256 }
 0x264   : > { %p617_p9 = scmp.ne.s32.totalorder %s860_s9, %s616_s29  ;;  %p621_p0 = scmp.lt.u32.totalorder %s860_s9, %s907_s3 }
 0x265   : > { %p622_p11 = scmp.lt.u32.totalorder %s620_s22, %s616_s29  ;;  %p624_p4 = scmp.lt.u32.totalorder %s616_s29, %s860_s9 }
 0x266   : > { %p618_p2 = pnand %p617_p9, %p792_p12 }
 0x267   : > { %p623_p1 = por %p622_p11, %p621_p0 }
 0x268   : > { %p619_p5 = pneg %p618_p2 }
 0x269   : > { %p625_p6 = por %p624_p4, %p623_p1 }
 0x26b   : > { %p626_p8 = pnand %p625_p6, %p619_p5 }
 0x26d   : > { %629 = shalt.err (!%p626_p8)
}
 0x26e   : > { %479 = dma.vmem_to_hbm [thread:$0]  (%p792_p12), %s862_s26, 128, %s860_s9, %s328_s16  }
 0x26f PF: > { %s353_s18 = sand.u32 1, %s660_s12   ;;  %p922_p10 = scmp.ne.s32.totalorder %s912_s19, 0 }
 0x270   : > { %p923_p13 = scmp.ge.s32.totalorder %s672_s15, 2  ;;  %s354_s20 = scalar_lea.sflag [#allocation4], %s353_s18 }
 0x272   : > { %p490_p3 = pnand %p923_p13, %p922_p10 }
 0x274   : > { %655 = dma.done.wait (!%p490_p3), %s354_s20, 128  }
 0x275   : > { %657 = vsyncadd (!%p490_p3), %s354_s20, 4294967168  ;;  %p17_p7 = scmp.ge.s32.totalorder %s757_s24, 4   ;;  %s924_s12 = smov %s664_s13 }
 0x276   : > { %s925_s13 = smov %s668_s14  ;;  %s926_s14 = smov %s788_s17 }
 0x277   : > { %s927_s15 = smov %s757_s24  ;;  %19 = sbr.rel (!%p17_p7) target bundleno = 6 (0x6), region = 81 }
 0x27e   :  { %359 = vsyncpa [#allocation3], 1 }
 0x27f   :  { %361 = vsyncpa [#allocation3 + $0x1], 1 }
 0x280   :  { %362 = vsyncpa [#allocation6], 1 }
 0x281   :  { %363 = vsyncpa [#allocation4], 1 }
 0x282   :  { %365 = vsyncpa [#allocation4 + $0x1], 1 }

</bundles_post_ra>
